<compile_context>
chip_gen: v7x
topology: tpu7x:2x2x1
jax: 0.10.0
libtpu: 0.0.40
codegen_flags: <defaults>
</compile_context>

<pallas_src>
import functools

import jax
import jax.numpy as jnp
from jax import lax
from jax.experimental import pallas as pl
from jax.experimental.pallas import tpu as pltpu


def _fused_conv_kernel(x_ref, w_ref, out_ref, patches_ref, *,
                       N, Cpad, KH, KW, W, HoWo, padding):
    # x_ref      : (N, Cpad, Lext)          zero-extended flat image rows
    #                                        (channel Cpad-? slot C is all-ones)
    # w_ref      : (O, KH*KW*Cpad)          fused conv weights + folded bias
    # out_ref    : (O, N*HoWo)              lane-dense output block
    # patches_ref: VMEM (KH*KW*Cpad, N*HoWo) scratch -> in-kernel im2col matrix

    # Per-kw W-boundary masks from a lane iota: tap (kh, kw) at output column
    # wo is valid iff padding <= wo + kw <= W - 1 + padding.  Built once,
    # hoisted above the tap loop; the all-valid tap (kw == padding) skips the
    # multiply entirely.
    col = lax.broadcasted_iota(jnp.int32, (1, HoWo), 1) % W
    fmasks = []
    for kw in range(KW):
        lo = padding - kw
        hi = W - 1 + padding - kw
        m = None
        if lo > 0:
            m = col >= lo
        if hi < W - 1:
            c2 = col <= hi
            m = c2 if m is None else jnp.logical_and(m, c2)
        fmasks.append(None if m is None else m.astype(jnp.float32))

    # In-kernel im2col: row block t*Cpad..t*Cpad+Cpad is the flat image shifted
    # by tap t = (kh, kw), W-boundary zeroed by the mask.  All stores are full
    # 8-sublane / 128-lane tiles (Cpad % 8 == 0, HoWo % 128 == 0) -> unmasked.
    for n in range(N):
        xn = x_ref[n]                                  # (Cpad, Lext), loaded once
        for kh in range(KH):
            for kw in range(KW):
                t = kh * KW + kw
                off = kh * W + kw                      # static lane offset
                piece = xn[:, off:off + HoWo]          # (Cpad, HoWo)
                if fmasks[kw] is not None:
                    piece = piece * fmasks[kw]
                patches_ref[t * Cpad:(t + 1) * Cpad,
                            n * HoWo:(n + 1) * HoWo] = piece

    # Single MXU matmul for the whole batch; bias is already folded into w_ref
    # via the constant-ones channel, so no extra broadcast/add is needed.
    acc = jnp.dot(w_ref[...], patches_ref[...],
                  preferred_element_type=jnp.float32)
    out_ref[...] = acc.astype(out_ref.dtype)


@functools.partial(jax.jit, static_argnames=("padding",))
def depthwise_separable_conv(x_nchw, wd, bd, wp, bp, *, padding=1):
    """x_nchw: (N, C, H, W); wd: (C, 1, KH, KW); bd: (C,);
    wp: (O, C, 1, 1); bp: (O,).  Returns (N, O, Ho, Wo) float32."""
    N, C, H, W = x_nchw.shape
    KH, KW = wd.shape[2], wd.shape[3]
    O = wp.shape[0]
    if KW - 1 != 2 * padding:
        raise NotImplementedError("requires 2*padding == kernel_size - 1")
    Ho = H + 2 * padding - KH + 1
    Wo = W + 2 * padding - KW + 1            # == W by the constraint above
    HoWo = Ho * Wo
    Hp = H + 2 * padding
    f32 = jnp.float32

    # Per-tap channel block padded to a full sublane tile, with one spare slot
    # (index C) reserved for the constant-ones bias channel.
    Cpad = ((C + 1 + 7) // 8) * 8
    K = KH * KW * Cpad

    # ---- fused weights / bias (tiny, wrapper-side, fused under jit) ----
    wp2 = wp[:, :, 0, 0].astype(f32)                        # (O, C)
    wd2 = wd[:, 0].astype(f32)                              # (C, KH, KW)
    w_eff = wp2[:, :, None, None] * wd2[None]               # (O, C, KH, KW)
    w_tap = jnp.transpose(w_eff, (0, 2, 3, 1))              # (O, KH, KW, C)
    w_tap = jnp.pad(w_tap, ((0, 0), (0, 0), (0, 0), (0, Cpad - C)))
    w_mat = w_tap.reshape(O, K)                             # (O, K), tap-major
    b_eff = bp.astype(f32) + wp2 @ bd.astype(f32)           # (O,)
    # Fold the bias: the ones-channel slot of the all-valid tap (kh=0, kw=padding).
    w_mat = w_mat.at[:, padding * Cpad + C].set(b_eff)

    # ---- input: pad H only, flatten (H, W) row-major, zero-extend the flat
    # axis so every tap is a static lane-offset slice; append the ones channel
    # (bias) and zero channels up to Cpad.
    xh = jnp.pad(x_nchw.astype(f32),
                 ((0, 0), (0, 0), (padding, padding), (0, 0)))     # (N, C, Hp, W)
    xf = xh.reshape(N, C, Hp * W)
    need = max(padding + Hp * W, (KH - 1) * W + (KW - 1) + HoWo)
    Lext = ((need + 127) // 128) * 128                             # lane-aligned
    xflat = jnp.pad(xf, ((0, 0), (0, 0), (padding, Lext - padding - Hp * W)))
    ones_ch = jnp.ones((N, 1, Lext), f32)
    zero_ch = jnp.zeros((N, Cpad - C - 1, Lext), f32)
    x_ext = jnp.concatenate([xflat, ones_ch, zero_ch], axis=1)     # (N, Cpad, Lext)

    kernel = functools.partial(_fused_conv_kernel, N=N, Cpad=Cpad, KH=KH,
                               KW=KW, W=W, HoWo=HoWo, padding=padding)

    out_flat = pl.pallas_call(
        kernel,
        out_shape=jax.ShapeDtypeStruct((O, N * HoWo), f32),
        grid_spec=pltpu.PrefetchScalarGridSpec(
            num_scalar_prefetch=0,
            grid=(1,),
            in_specs=[
                pl.BlockSpec((N, Cpad, Lext), lambda i: (0, 0, 0)),
                pl.BlockSpec((O, K), lambda i: (0, 0)),
            ],
            out_specs=pl.BlockSpec((O, N * HoWo), lambda i: (0, 0)),
            scratch_shapes=[pltpu.VMEM((K, N * HoWo), f32)],
        ),
        compiler_params=pltpu.CompilerParams(
            dimension_semantics=("arbitrary",)),
    )(x_ext, w_mat)

    # (O, N*HoWo) -> (N, O, Ho, Wo): tiny reshape + transpose, fused under jit.
    return jnp.transpose(out_flat.reshape(O, N, Ho, Wo), (1, 0, 2, 3))


def _reference(x_nchw, wd, bd, wp, bp, *, padding=1):
    """Pure-JAX reference matching torch.nn.Conv2d semantics (unfused)."""
    C = x_nchw.shape[1]
    dw = lax.conv_general_dilated(
        x_nchw, wd, window_strides=(1, 1),
        padding=((padding, padding), (padding, padding)),
        dimension_numbers=("NCHW", "OIHW", "NCHW"),
        feature_group_count=C)
    dw = dw + bd.reshape(1, -1, 1, 1)
    pw = lax.conv_general_dilated(
        dw, wp, window_strides=(1, 1), padding=((0, 0), (0, 0)),
        dimension_numbers=("NCHW", "OIHW", "NCHW"))
    return pw + bp.reshape(1, -1, 1, 1)


if __name__ == "__main__":
    # Module config: DepthWiseSeparableConv(in_dim=4, out_dim=8, kernel_size=3, padding=1)
    N, C, H, W = 2, 4, 16, 16
    O, KH, KW, PAD = 8, 3, 3, 1

    key = jax.random.PRNGKey(0)
    kx, k1, k2, k3, k4 = jax.random.split(key, 5)
    x = jax.random.normal(kx, (N, C, H, W), dtype=jnp.float32)
    # PyTorch-shaped parameters, deterministically initialized.
    wd = jax.random.normal(k1, (C, 1, KH, KW), dtype=jnp.float32) * 0.2   # depthwise weight
    bd = jax.random.normal(k2, (C,), dtype=jnp.float32) * 0.1             # depthwise bias
    wp = jax.random.normal(k3, (O, C, 1, 1), dtype=jnp.float32) * 0.2     # pointwise weight
    bp = jax.random.normal(k4, (O,), dtype=jnp.float32) * 0.1             # pointwise bias

    out = depthwise_separable_conv(x, wd, bd, wp, bp, padding=PAD)
    out = jax.block_until_ready(out)

    ref = _reference(x, wd, bd, wp, bp, padding=PAD)
    assert out.shape == (N, O, H, W), out.shape
    assert jnp.allclose(out, ref, atol=1e-4, rtol=1e-4), float(jnp.max(jnp.abs(out - ref)))

    print("KERNEL_OK")
</pallas_src>

<mosaic_0001>
module attributes {stable_mosaic.version = 11 : i64} {
  func.func @_fused_conv_kernel(%arg0: i32, %arg1: memref<2x8x384xf32, #tpu.memory_space<vmem>>, %arg2: memref<8x72xf32, #tpu.memory_space<vmem>>, %arg3: memref<8x512xf32, #tpu.memory_space<vmem>>, %arg4: memref<72x512xf32, #tpu.memory_space<vmem>>) attributes {dimension_semantics = [#tpu.dimension_semantics<arbitrary>], iteration_bounds = array<i64: 1>, scalar_prefetch = 0 : i64, scratch_operands = 1 : i64, tpu.core_type = #tpu.core_type<tc>, window_params = [{pipeline_mode = #tpu.pipeline_mode<synchronous>, transform_indices = @transform_0, window_bounds = array<i64: 2, 8, 384>}, {pipeline_mode = #tpu.pipeline_mode<synchronous>, transform_indices = @transform_1, window_bounds = array<i64: 8, 72>}, {pipeline_mode = #tpu.pipeline_mode<synchronous>, transform_indices = @transform_2, window_bounds = array<i64: 8, 512>}]} {
    %0 = tpu.iota {dimensions = array<i32: 1>} : vector<1x256xi32>
    %c16_i32 = arith.constant 16 : i32
    %c0_i32 = arith.constant 0 : i32
    %1 = arith.cmpi eq, %c16_i32, %c0_i32 : i32
    %c1_i32 = arith.constant 1 : i32
    %2 = arith.select %1, %c1_i32, %c16_i32 : i32
    %3 = vector.broadcast %2 : i32 to vector<1x256xi32>
    %4 = arith.remsi %0, %3 : vector<1x256xi32>
    %c0_i32_0 = arith.constant 0 : i32
    %5 = vector.broadcast %c0_i32_0 : i32 to vector<1x256xi32>
    %6 = arith.cmpi ne, %4, %5 : vector<1x256xi32>
    %c0_i32_1 = arith.constant 0 : i32
    %7 = vector.broadcast %c0_i32_1 : i32 to vector<1x256xi32>
    %8 = arith.cmpi slt, %4, %7 : vector<1x256xi32>
    %c0_i32_2 = arith.constant 0 : i32
    %9 = arith.cmpi slt, %2, %c0_i32_2 : i32
    %10 = vector.broadcast %9 : i1 to vector<1x256xi1>
    %11 = vector.broadcast %10 : vector<1x256xi1> to vector<1x256xi1>
    %12 = arith.xori %8, %11 : vector<1x256xi1>
    %13 = arith.andi %12, %6 : vector<1x256xi1>
    %14 = vector.broadcast %2 : i32 to vector<1x256xi32>
    %15 = arith.addi %4, %14 : vector<1x256xi32>
    %16 = arith.select %13, %15, %4 : vector<1x256xi1>, vector<1x256xi32>
    %c1_i32_3 = arith.constant 1 : i32
    %17 = vector.broadcast %c1_i32_3 : i32 to vector<1x256xi32>
    %18 = arith.cmpi sge, %16, %17 : vector<1x256xi32>
    %19 = arith.extui %18 : vector<1x256xi1> to vector<1x256xi32>
    %20 = arith.sitofp %19 : vector<1x256xi32> to vector<1x256xf32>
    %c14_i32 = arith.constant 14 : i32
    %21 = vector.broadcast %c14_i32 : i32 to vector<1x256xi32>
    %22 = arith.cmpi sle, %16, %21 : vector<1x256xi32>
    %23 = arith.extui %22 : vector<1x256xi1> to vector<1x256xi32>
    %24 = arith.sitofp %23 : vector<1x256xi32> to vector<1x256xf32>
    %c0 = arith.constant 0 : index
    %c0_4 = arith.constant 0 : index
    %c0_5 = arith.constant 0 : index
    %25 = vector.load %arg1[%c0, %c0_4, %c0_5] : memref<2x8x384xf32, #tpu.memory_space<vmem>>, vector<1x8x384xf32>
    %26 = vector.shape_cast %25 : vector<1x8x384xf32> to vector<8x384xf32>
    %27 = vector.extract_strided_slice %26 {offsets = [0, 0], sizes = [8, 256], strides = [1, 1]} : vector<8x384xf32> to vector<8x256xf32>
    %28 = vector.broadcast %20 : vector<1x256xf32> to vector<8x256xf32>
    %29 = arith.mulf %27, %28 : vector<8x256xf32>
    %c0_6 = arith.constant 0 : index
    %c0_7 = arith.constant 0 : index
    %30 = vector.load %arg4[%c0_6, %c0_7] : memref<72x512xf32, #tpu.memory_space<vmem>>, vector<8x256xf32>
    tpu.vector_store %arg4[%c0_6, %c0_7], %29 {strides = array<i32>} : memref<72x512xf32, #tpu.memory_space<vmem>>, vector<8x256xf32>,
    %31 = vector.extract_strided_slice %26 {offsets = [0, 1], sizes = [8, 256], strides = [1, 1]} : vector<8x384xf32> to vector<8x256xf32>
    %c8 = arith.constant 8 : index
    %c0_8 = arith.constant 0 : index
    %32 = vector.load %arg4[%c8, %c0_8] : memref<72x512xf32, #tpu.memory_space<vmem>>, vector<8x256xf32>
    tpu.vector_store %arg4[%c8, %c0_8], %31 {strides = array<i32>} : memref<72x512xf32, #tpu.memory_space<vmem>>, vector<8x256xf32>,
    %33 = vector.extract_strided_slice %26 {offsets = [0, 2], sizes = [8, 256], strides = [1, 1]} : vector<8x384xf32> to vector<8x256xf32>
    %34 = vector.broadcast %24 : vector<1x256xf32> to vector<8x256xf32>
    %35 = arith.mulf %33, %34 : vector<8x256xf32>
    %c16 = arith.constant 16 : index
    %c0_9 = arith.constant 0 : index
    %36 = vector.load %arg4[%c16, %c0_9] : memref<72x512xf32, #tpu.memory_space<vmem>>, vector<8x256xf32>
    tpu.vector_store %arg4[%c16, %c0_9], %35 {strides = array<i32>} : memref<72x512xf32, #tpu.memory_space<vmem>>, vector<8x256xf32>,
    %37 = vector.extract_strided_slice %26 {offsets = [0, 16], sizes = [8, 256], strides = [1, 1]} : vector<8x384xf32> to vector<8x256xf32>
    %38 = vector.broadcast %20 : vector<1x256xf32> to vector<8x256xf32>
    %39 = arith.mulf %37, %38 : vector<8x256xf32>
    %c24 = arith.constant 24 : index
    %c0_10 = arith.constant 0 : index
    %40 = vector.load %arg4[%c24, %c0_10] : memref<72x512xf32, #tpu.memory_space<vmem>>, vector<8x256xf32>
    tpu.vector_store %arg4[%c24, %c0_10], %39 {strides = array<i32>} : memref<72x512xf32, #tpu.memory_space<vmem>>, vector<8x256xf32>,
    %41 = vector.extract_strided_slice %26 {offsets = [0, 17], sizes = [8, 256], strides = [1, 1]} : vector<8x384xf32> to vector<8x256xf32>
    %c32 = arith.constant 32 : index
    %c0_11 = arith.constant 0 : index
    %42 = vector.load %arg4[%c32, %c0_11] : memref<72x512xf32, #tpu.memory_space<vmem>>, vector<8x256xf32>
    tpu.vector_store %arg4[%c32, %c0_11], %41 {strides = array<i32>} : memref<72x512xf32, #tpu.memory_space<vmem>>, vector<8x256xf32>,
    %43 = vector.extract_strided_slice %26 {offsets = [0, 18], sizes = [8, 256], strides = [1, 1]} : vector<8x384xf32> to vector<8x256xf32>
    %44 = vector.broadcast %24 : vector<1x256xf32> to vector<8x256xf32>
    %45 = arith.mulf %43, %44 : vector<8x256xf32>
    %c40 = arith.constant 40 : index
    %c0_12 = arith.constant 0 : index
    %46 = vector.load %arg4[%c40, %c0_12] : memref<72x512xf32, #tpu.memory_space<vmem>>, vector<8x256xf32>
    tpu.vector_store %arg4[%c40, %c0_12], %45 {strides = array<i32>} : memref<72x512xf32, #tpu.memory_space<vmem>>, vector<8x256xf32>,
    %47 = vector.extract_strided_slice %26 {offsets = [0, 32], sizes = [8, 256], strides = [1, 1]} : vector<8x384xf32> to vector<8x256xf32>
    %48 = vector.broadcast %20 : vector<1x256xf32> to vector<8x256xf32>
    %49 = arith.mulf %47, %48 : vector<8x256xf32>
    %c48 = arith.constant 48 : index
    %c0_13 = arith.constant 0 : index
    %50 = vector.load %arg4[%c48, %c0_13] : memref<72x512xf32, #tpu.memory_space<vmem>>, vector<8x256xf32>
    tpu.vector_store %arg4[%c48, %c0_13], %49 {strides = array<i32>} : memref<72x512xf32, #tpu.memory_space<vmem>>, vector<8x256xf32>,
    %51 = vector.extract_strided_slice %26 {offsets = [0, 33], sizes = [8, 256], strides = [1, 1]} : vector<8x384xf32> to vector<8x256xf32>
    %c56 = arith.constant 56 : index
    %c0_14 = arith.constant 0 : index
    %52 = vector.load %arg4[%c56, %c0_14] : memref<72x512xf32, #tpu.memory_space<vmem>>, vector<8x256xf32>
    tpu.vector_store %arg4[%c56, %c0_14], %51 {strides = array<i32>} : memref<72x512xf32, #tpu.memory_space<vmem>>, vector<8x256xf32>,
    %53 = vector.extract_strided_slice %26 {offsets = [0, 34], sizes = [8, 256], strides = [1, 1]} : vector<8x384xf32> to vector<8x256xf32>
    %54 = vector.broadcast %24 : vector<1x256xf32> to vector<8x256xf32>
    %55 = arith.mulf %53, %54 : vector<8x256xf32>
    %c64 = arith.constant 64 : index
    %c0_15 = arith.constant 0 : index
    %56 = vector.load %arg4[%c64, %c0_15] : memref<72x512xf32, #tpu.memory_space<vmem>>, vector<8x256xf32>
    tpu.vector_store %arg4[%c64, %c0_15], %55 {strides = array<i32>} : memref<72x512xf32, #tpu.memory_space<vmem>>, vector<8x256xf32>,
    %c1 = arith.constant 1 : index
    %c0_16 = arith.constant 0 : index
    %c0_17 = arith.constant 0 : index
    %57 = vector.load %arg1[%c1, %c0_16, %c0_17] : memref<2x8x384xf32, #tpu.memory_space<vmem>>, vector<1x8x384xf32>
    %58 = vector.shape_cast %57 : vector<1x8x384xf32> to vector<8x384xf32>
    %59 = vector.extract_strided_slice %58 {offsets = [0, 0], sizes = [8, 256], strides = [1, 1]} : vector<8x384xf32> to vector<8x256xf32>
    %60 = vector.broadcast %20 : vector<1x256xf32> to vector<8x256xf32>
    %61 = arith.mulf %59, %60 : vector<8x256xf32>
    %c0_18 = arith.constant 0 : index
    %c256 = arith.constant 256 : index
    %62 = vector.load %arg4[%c0_18, %c256] : memref<72x512xf32, #tpu.memory_space<vmem>>, vector<8x256xf32>
    tpu.vector_store %arg4[%c0_18, %c256], %61 {strides = array<i32>} : memref<72x512xf32, #tpu.memory_space<vmem>>, vector<8x256xf32>,
    %63 = vector.extract_strided_slice %58 {offsets = [0, 1], sizes = [8, 256], strides = [1, 1]} : vector<8x384xf32> to vector<8x256xf32>
    %c8_19 = arith.constant 8 : index
    %c256_20 = arith.constant 256 : index
    %64 = vector.load %arg4[%c8_19, %c256_20] : memref<72x512xf32, #tpu.memory_space<vmem>>, vector<8x256xf32>
    tpu.vector_store %arg4[%c8_19, %c256_20], %63 {strides = array<i32>} : memref<72x512xf32, #tpu.memory_space<vmem>>, vector<8x256xf32>,
    %65 = vector.extract_strided_slice %58 {offsets = [0, 2], sizes = [8, 256], strides = [1, 1]} : vector<8x384xf32> to vector<8x256xf32>
    %66 = vector.broadcast %24 : vector<1x256xf32> to vector<8x256xf32>
    %67 = arith.mulf %65, %66 : vector<8x256xf32>
    %c16_21 = arith.constant 16 : index
    %c256_22 = arith.constant 256 : index
    %68 = vector.load %arg4[%c16_21, %c256_22] : memref<72x512xf32, #tpu.memory_space<vmem>>, vector<8x256xf32>
    tpu.vector_store %arg4[%c16_21, %c256_22], %67 {strides = array<i32>} : memref<72x512xf32, #tpu.memory_space<vmem>>, vector<8x256xf32>,
    %69 = vector.extract_strided_slice %58 {offsets = [0, 16], sizes = [8, 256], strides = [1, 1]} : vector<8x384xf32> to vector<8x256xf32>
    %70 = vector.broadcast %20 : vector<1x256xf32> to vector<8x256xf32>
    %71 = arith.mulf %69, %70 : vector<8x256xf32>
    %c24_23 = arith.constant 24 : index
    %c256_24 = arith.constant 256 : index
    %72 = vector.load %arg4[%c24_23, %c256_24] : memref<72x512xf32, #tpu.memory_space<vmem>>, vector<8x256xf32>
    tpu.vector_store %arg4[%c24_23, %c256_24], %71 {strides = array<i32>} : memref<72x512xf32, #tpu.memory_space<vmem>>, vector<8x256xf32>,
    %73 = vector.extract_strided_slice %58 {offsets = [0, 17], sizes = [8, 256], strides = [1, 1]} : vector<8x384xf32> to vector<8x256xf32>
    %c32_25 = arith.constant 32 : index
    %c256_26 = arith.constant 256 : index
    %74 = vector.load %arg4[%c32_25, %c256_26] : memref<72x512xf32, #tpu.memory_space<vmem>>, vector<8x256xf32>
    tpu.vector_store %arg4[%c32_25, %c256_26], %73 {strides = array<i32>} : memref<72x512xf32, #tpu.memory_space<vmem>>, vector<8x256xf32>,
    %75 = vector.extract_strided_slice %58 {offsets = [0, 18], sizes = [8, 256], strides = [1, 1]} : vector<8x384xf32> to vector<8x256xf32>
    %76 = vector.broadcast %24 : vector<1x256xf32> to vector<8x256xf32>
    %77 = arith.mulf %75, %76 : vector<8x256xf32>
    %c40_27 = arith.constant 40 : index
    %c256_28 = arith.constant 256 : index
    %78 = vector.load %arg4[%c40_27, %c256_28] : memref<72x512xf32, #tpu.memory_space<vmem>>, vector<8x256xf32>
    tpu.vector_store %arg4[%c40_27, %c256_28], %77 {strides = array<i32>} : memref<72x512xf32, #tpu.memory_space<vmem>>, vector<8x256xf32>,
    %79 = vector.extract_strided_slice %58 {offsets = [0, 32], sizes = [8, 256], strides = [1, 1]} : vector<8x384xf32> to vector<8x256xf32>
    %80 = vector.broadcast %20 : vector<1x256xf32> to vector<8x256xf32>
    %81 = arith.mulf %79, %80 : vector<8x256xf32>
    %c48_29 = arith.constant 48 : index
    %c256_30 = arith.constant 256 : index
    %82 = vector.load %arg4[%c48_29, %c256_30] : memref<72x512xf32, #tpu.memory_space<vmem>>, vector<8x256xf32>
    tpu.vector_store %arg4[%c48_29, %c256_30], %81 {strides = array<i32>} : memref<72x512xf32, #tpu.memory_space<vmem>>, vector<8x256xf32>,
    %83 = vector.extract_strided_slice %58 {offsets = [0, 33], sizes = [8, 256], strides = [1, 1]} : vector<8x384xf32> to vector<8x256xf32>
    %c56_31 = arith.constant 56 : index
    %c256_32 = arith.constant 256 : index
    %84 = vector.load %arg4[%c56_31, %c256_32] : memref<72x512xf32, #tpu.memory_space<vmem>>, vector<8x256xf32>
    tpu.vector_store %arg4[%c56_31, %c256_32], %83 {strides = array<i32>} : memref<72x512xf32, #tpu.memory_space<vmem>>, vector<8x256xf32>,
    %85 = vector.extract_strided_slice %58 {offsets = [0, 34], sizes = [8, 256], strides = [1, 1]} : vector<8x384xf32> to vector<8x256xf32>
    %86 = vector.broadcast %24 : vector<1x256xf32> to vector<8x256xf32>
    %87 = arith.mulf %85, %86 : vector<8x256xf32>
    %c64_33 = arith.constant 64 : index
    %c256_34 = arith.constant 256 : index
    %88 = vector.load %arg4[%c64_33, %c256_34] : memref<72x512xf32, #tpu.memory_space<vmem>>, vector<8x256xf32>
    tpu.vector_store %arg4[%c64_33, %c256_34], %87 {strides = array<i32>} : memref<72x512xf32, #tpu.memory_space<vmem>>, vector<8x256xf32>,
    %c0_35 = arith.constant 0 : index
    %c0_36 = arith.constant 0 : index
    %89 = vector.load %arg2[%c0_35, %c0_36] : memref<8x72xf32, #tpu.memory_space<vmem>>, vector<8x72xf32>
    %c0_37 = arith.constant 0 : index
    %c0_38 = arith.constant 0 : index
    %90 = vector.load %arg4[%c0_37, %c0_38] : memref<72x512xf32, #tpu.memory_space<vmem>>, vector<72x512xf32>
    %cst = arith.constant dense<0.000000e+00> : vector<8x512xf32>
    %91 = tpu.matmul %89, %90, %cst {dimension_numbers = #tpu.dot_dimension_numbers<[1], [0], [0], [1], [0, 0, 1, 1], [], []>} : vector<8x72xf32>, vector<72x512xf32>, vector<8x512xf32> -> vector<8x512xf32>
    %c0_39 = arith.constant 0 : index
    %c0_40 = arith.constant 0 : index
    %92 = vector.load %arg3[%c0_39, %c0_40] : memref<8x512xf32, #tpu.memory_space<vmem>>, vector<8x512xf32>
    tpu.vector_store %arg3[%c0_39, %c0_40], %91 {strides = array<i32>} : memref<8x512xf32, #tpu.memory_space<vmem>>, vector<8x512xf32>,
    return
  }
  func.func @transform_0(%arg0: i32) -> (i32, i32, i32) {
    %c0_i32 = arith.constant 0 : i32
    %c0_i32_0 = arith.constant 0 : i32
    %c0_i32_1 = arith.constant 0 : i32
    %c0_i32_2 = arith.constant 0 : i32
    return %c0_i32, %c0_i32_0, %c0_i32_1 : i32, i32, i32
  }
  func.func @transform_1(%arg0: i32) -> (i32, i32) {
    %c0_i32 = arith.constant 0 : i32
    %c0_i32_0 = arith.constant 0 : i32
    %c0_i32_1 = arith.constant 0 : i32
    return %c0_i32, %c0_i32_0 : i32, i32
  }
  func.func @transform_2(%arg0: i32) -> (i32, i32) {
    %c0_i32 = arith.constant 0 : i32
    %c0_i32_0 = arith.constant 0 : i32
    %c0_i32_1 = arith.constant 0 : i32
    return %c0_i32, %c0_i32_0 : i32, i32
  }
}

</mosaic_0001>

<bundles_post_ra>
// kernel: depthwise_separable_conv.1
= control target key start
LH: loop header
LB: loop body
LE: loop exit
PB: predicated region body
PF: predicated region fallthrough
CT: control target
= control target key end

     0   :  { %v11_v0 = vlaneseq  ;;  %v756_v1 = vmov 0.0   ;;  %s757_s9 = smov 18   ;;  %s758_s10 = smov 2   ;;  %vm79_vm4 = vcmask 15360   ;;  %vm109_vm5 = vcmask 130048   ;;  %s971_s0 = inlined_call_operand.vmem [shape: f32[2,8,384], index: 0, kind: input, shape index: {}]   ;;  %s972_s1 = inlined_call_operand.vmem [shape: f32[8,72], index: 1, kind: input, shape index: {}]   ;;  %s973_s2 = inlined_call_operand.vmem [shape: f32[8,512], index: 2, kind: output, shape index: {}]  }
   0x1   :  { %485 = vmatprep.mubr.f32.mxu0 %v756_v1  ;;  %556 = vmatprep.mubr.f32.mxu1 %v756_v1  ;;  %v794_v12 = vld [vmem:[%s971_s0 + $0x8] sm:$0xff]  ;;  %v799_v13 = vld [vmem:[%s971_s0 + $0x10] sm:$0xff]  ;;  %s759_s15 = smov 32   ;;  %s760_s16 = smov 16   ;;  %v806_v15 = vld [vmem:[%s971_s0] sm:$0xff]  ;;  %vm150_vm6 = vcmask 146432  }
   0x2   :  { %v12_v2 = vand.u32 127, %v11_v0  ;;  %v651_v14 = vpack.i.bf16 %v799_v13, %v794_v12  ;;  %v811_v16 = vld [vmem:[%s971_s0 + $0x18] sm:$0xff]  ;;  %v816_v17 = vld [vmem:[%s971_s0 + $0x20] sm:$0xff]  ;;  %v821_v18 = vld [vmem:[%s971_s0 + $0x28] sm:$0xff]  ;;  %s761_s25 = smov 34   ;;  %s762_s26 = smov 127  }
   0x3   :  { %v661_v19 = vpack.i.bf16 %v811_v16, %v806_v15  ;;  %v656_v20 = vpack.i.bf16 %v821_v18, %v816_v17  ;;  %s763_s27 = smov 95   ;;  %s764_s28 = smov 111   ;;  %vm178_vm7 = vcmask 261120   ;;  %vm66_vm8 = vcmask 1039360  }
   0x4   :  { %v13_v3 = vadd.s32 128, %v12_v2  ;;  %v18_v4 = vand.u32 15, %v12_v2  ;;  %s765_s0 = smov 126   ;;  %s766_s29 = smov 112   ;;  %vm219_vm9 = vcmask 277504   ;;  %vm96_vm10 = vcmask 1031168  }
   0x5   :  { %s767_s30 = smov 96   ;;  %s768_s3 = smov 110   ;;  %vm139_vm11 = vcmask 908288   ;;  %vm208_vm12 = vcmask 777216   ;;  %vm126_vm13 = vcmask 916480   ;;  %vm195_vm14 = vcmask 785408  }
   0x6   :  { %v25_v5 = vand.u32 15, %v13_v3  ;;  %vm38_vm0 = vcmp.ge.s32.totalorder %v18_v4, 1  ;;  %vm44_vm1 = vcmp.le.s32.totalorder %v18_v4, 14  ;;  %s769_s4 = smov 94   ;;  %vm167_vm15 = vcmask 900096  }
   0x7   :  { %v573_v6 = vsel %vm44_vm1, 1.0, %v756_v1  ;;  %v785_v8 = vsel %vm38_vm0, 1.0, %v756_v1  ;;  %vm236_vm0 = vcmask 769024   ;;  %vm417_vm1 = vcmask 588800  }
   0x8   :  { %vm45_vm2 = vcmp.le.s32.totalorder %v25_v5, 14  ;;  %vm39_vm3 = vcmp.ge.s32.totalorder %v25_v5, 1  ;;  %v53_v54 = vmul.f32 %v785_v8, %v806_v15  ;;  %v247_v63 = vmul.f32 %v811_v16, %v785_v8 }
   0x9   :  { %v574_v7 = vsel %vm45_vm2, 1.0, %v756_v1  ;;  %v787_v9 = vsel %vm39_vm3, 1.0, %v756_v1 }
   0xa   :  { %v636_v10 = vpack.i.bf16 %v574_v7, %v573_v6  ;;  %v641_v11 = vpack.i.bf16 %v787_v9, %v785_v8  ;;  %v54_v50 = vmul.f32 %v787_v9, %v794_v12  ;;  %v248_v58 = vmul.f32 %v816_v17, %v787_v9 }
   0xc   :  { %637 = vrot.lane.b32.xlu1 %v636_v10, %s757_s9  ;;  %627 = vrot.lane.b32.xlu0 %v636_v10, %s758_s10 }
  0x10   :  { %642 = vrot.lane.b32.xlu1 %v641_v11, %s759_s15  ;;  %632 = vrot.lane.b32.xlu0 %v641_v11, %s760_s16 }
  0x14   :  { %647 = vrot.lane.b32.xlu0 %v636_v10, %s761_s25  ;;  %652 = vrot.lane.b32.xlu1 %v651_v14, %s762_s26 }
  0x18   :  { %662 = vrot.lane.b32.xlu1 %v661_v19, %s762_s26  ;;  %657 = vrot.lane.b32.xlu0 %v656_v20, %s762_s26 }
  0x1c   :  { %682 = vrot.lane.b32.xlu1 %v651_v14, %s763_s27  ;;  %667 = vrot.lane.b32.xlu0 %v651_v14, %s764_s28 }
  0x20   :  { %687 = vrot.lane.b32.xlu1 %v656_v20, %s763_s27  ;;  %672 = vrot.lane.b32.xlu0 %v656_v20, %s764_s28 }
  0x24   :  { %692 = vrot.lane.b32.xlu1 %v661_v19, %s763_s27  ;;  %677 = vrot.lane.b32.xlu0 %v661_v19, %s764_s28 }
  0x7e   :  { %v638_v21 = vpop.permute.xlu1 %637  ;;  %v628_v22 = vpop.permute.xlu0 %627 }
  0x7f   :  { %v629_v23 = vunpack.i.l.bf16 %v628_v22  ;;  %v630_v24 = vunpack.i.h.bf16 %v628_v22  ;;  %v639_v29 = vunpack.i.l.bf16 %v638_v21  ;;  %v838_v47 = vunpack.i.h.bf16 %v638_v21 }
  0x81   :  { %v84_v25 = vmul.f32 %v629_v23, %v806_v15  ;;  %v266_v26 = vmul.f32 %v629_v23, %v811_v16  ;;  %v80_v34 = vsel %vm79_vm4, %v629_v23, %v630_v24  ;;  %v155_v40 = vmul.f32 %v639_v29, %v806_v15 }
  0x82   :  { %v643_v27 = vpop.permute.xlu1 %642  ;;  %v633_v28 = vpop.permute.xlu0 %632  ;;  %v314_v41 = vmul.f32 %v639_v29, %v811_v16  ;;  %v85_v45 = vmul.f32 %v80_v34, %v794_v12  ;;  %v86_v46 = vmul.f32 %v630_v24, %v799_v13  ;;  %v267_v56 = vmul.f32 %v816_v17, %v80_v34 }
  0x83   :  { %v644_v30 = vunpack.i.l.bf16 %v643_v27  ;;  %v634_v31 = vunpack.i.l.bf16 %v633_v28  ;;  %v635_v32 = vunpack.i.h.bf16 %v633_v28  ;;  %v696_v33 = vpack.i.bf16 %v266_v26, %v84_v25 }
  0x84   :  { %v645_v48 = vunpack.i.h.bf16 %v643_v27  ;;  %v706_v51 = vpack.i.bf16 %v314_v41, %v155_v40  ;;  %v716_v55 = vpack.i.bf16 %v86_v46, %v85_v45  ;;  %v268_v57 = vmul.f32 %v630_v24, %v821_v18 }
  0x85   :  { %v114_v35 = vmul.f32 %v634_v31, %v806_v15  ;;  %v284_v36 = vmul.f32 %v634_v31, %v811_v16  ;;  %697 = vrot.lane.b32.xlu0 %v696_v33, %s765_s0  ;;  %v183_v37 = vmul.f32 %v644_v30, %v806_v15  ;;  %v332_v38 = vmul.f32 %v644_v30, %v811_v16 }
  0x86   :  { %v653_v42 = vpop.permute.xlu1 %652  ;;  %v110_v43 = vsel %vm109_vm5, %v634_v31, %v635_v32  ;;  %v648_v49 = vpop.permute.xlu0 %647  ;;  %v116_v53 = vmul.f32 %v635_v32, %v799_v13  ;;  %v151_v59 = vsel %vm150_vm6, %v639_v29, %v838_v47  ;;  %v179_v60 = vsel %vm178_vm7, %v644_v30, %v645_v48 }
  0x87   :  { %v701_v39 = vpack.i.bf16 %v284_v36, %v114_v35  ;;  %v711_v44 = vpack.i.bf16 %v332_v38, %v183_v37  ;;  %v115_v52 = vmul.f32 %v110_v43, %v794_v12  ;;  %v285_v61 = vmul.f32 %v816_v17, %v110_v43 }
  0x88   :  { %v286_v0 = vmul.f32 %v635_v32, %v821_v18  ;;  %v655_v1 = vunpack.i.h.bf16 %v653_v42  ;;  %v654_v2 = vunpack.i.l.bf16 %v653_v42  ;;  %v726_v10 = vpack.i.bf16 %v268_v57, %v267_v56 }
  0x89   :  { %702 = vrot.lane.b32.xlu1 %v701_v39, %s766_s29  ;;  %712 = vrot.lane.b32.xlu0 %v711_v44, %s767_s30  ;;  %v721_v5 = vpack.i.bf16 %v116_v53, %v115_v52  ;;  %v184_v11 = vmul.f32 %v179_v60, %v794_v12  ;;  %v185_v14 = vmul.f32 %v645_v48, %v799_v13  ;;  %v650_v27 = vunpack.i.h.bf16 %v648_v49 }
  0x8a   :  { %v663_v62 = vpop.permute.xlu1 %662  ;;  %v658_v4 = vpop.permute.xlu0 %657  ;;  %v68_v19 = vsel %vm66_vm8, %v654_v2, %v655_v1  ;;  %v731_v23 = vpack.i.bf16 %v286_v0, %v285_v61  ;;  %v649_v28 = vunpack.i.l.bf16 %v648_v49  ;;  %v156_v29 = vmul.f32 %v151_v59, %v794_v12 }
  0x8b   :  { %v665_v3 = vunpack.i.h.bf16 %v663_v62  ;;  %v664_v6 = vunpack.i.l.bf16 %v663_v62  ;;  %v660_v7 = vunpack.i.h.bf16 %v658_v4  ;;  %v659_v9 = vunpack.i.l.bf16 %v658_v4 }
  0x8c   :  { %v580_v8 = vpack.c.bf16 %v68_v19, %v54_v50  ;;  %v157_v30 = vmul.f32 %v838_v47, %v799_v13  ;;  %v746_v31 = vpack.i.bf16 %v185_v14, %v184_v11  ;;  %v333_v32 = vmul.f32 %v816_v17, %v179_v60 }
  0x8d   :  { %707 = vrot.lane.b32.xlu1 %v706_v51, %s768_s3  ;;  %717 = vrot.lane.b32.xlu0 %v716_v55, %s765_s0  ;;  %v67_v20 = vsel %vm66_vm8, %v664_v6, %v654_v2  ;;  %v261_v21 = vsel %vm66_vm8, %v659_v9, %v660_v7  ;;  %v260_v22 = vsel %vm66_vm8, %v665_v3, %v659_v9 }
  0x8e   :  { %v582_v24 = vpack.c.bf16 %v67_v20, %v53_v54  ;;  %v596_v25 = vpack.c.bf16 %v261_v21, %v248_v58  ;;  %v598_v26 = vpack.c.bf16 %v260_v22, %v247_v63  ;;  %581 = vmatprep.subr.bf16.mxu0 %v580_v8  ;;  %v334_v33 = vmul.f32 %v645_v48, %v821_v18  ;;  %v888_v46 = vpop.permute.xlu1 %682 }
  0x8f   :  { %v736_v34 = vpack.i.bf16 %v157_v30, %v156_v29  ;;  %v315_v35 = vmul.f32 %v816_v17, %v151_v59  ;;  %v316_v36 = vmul.f32 %v838_v47, %v821_v18  ;;  %v220_v37 = vsel %vm219_vm9, %v649_v28, %v650_v27 }
  0x90   :  { %583 = vmatpush1.bf16.msra.mxu0 %v582_v24  ;;  %597 = vmatprep.subr.bf16.mxu1 %v596_v25  ;;  %v751_v38 = vpack.i.bf16 %v334_v33, %v333_v32  ;;  %v225_v39 = vmul.f32 %v220_v37, %v794_v12  ;;  %v226_v41 = vmul.f32 %v650_v27, %v799_v13  ;;  %v886_v12 = vpop.permute.xlu0 %667  ;;  %v685_v53 = vunpack.i.h.bf16 %v888_v46 }
  0x91   :  { %722 = vrot.lane.b32.xlu1 %v721_v5, %s766_s29  ;;  %727 = vrot.lane.b32.xlu0 %v726_v10, %s765_s0  ;;  %v741_v40 = vpack.i.bf16 %v316_v36, %v315_v35  ;;  %v363_v42 = vmul.f32 %v816_v17, %v220_v37  ;;  %v364_v43 = vmul.f32 %v650_v27, %v821_v18  ;;  %v684_v54 = vunpack.i.l.bf16 %v888_v46 }
  0x92   :  { %599 = vmatpush1.bf16.msra.mxu1 %v598_v26  ;;  %v224_v44 = vmul.f32 %v649_v28, %v806_v15  ;;  %v362_v45 = vmul.f32 %v649_v28, %v811_v16  ;;  %v892_v47 = vpop.permute.xlu1 %687  ;;  %v670_v57 = vunpack.i.h.bf16 %v886_v12  ;;  %v669_v62 = vunpack.i.l.bf16 %v886_v12 }
  0x93   :  { %v690_v63 = vunpack.i.h.bf16 %v892_v47  ;;  %v689_v6 = vunpack.i.l.bf16 %v892_v47 }
  0x94   :  { %v890_v13 = vpop.permute.xlu0 %672  ;;  %v141_v37 = vsel %vm139_vm11, %v669_v62, %v670_v57 }
  0x95   :  { %732 = vrot.lane.b32.xlu1 %v731_v23, %s766_s29  ;;  %747 = vrot.lane.b32.xlu0 %v746_v31, %s767_s30  ;;  %v675_v7 = vunpack.i.h.bf16 %v890_v13  ;;  %v674_v29 = vunpack.i.l.bf16 %v890_v13 }
  0x96   :  { %v896_v48 = vpop.permute.xlu1 %692 }
  0x97   :  { %v694_v12 = vunpack.i.l.bf16 %v896_v48 }
  0x98   :  { %v894_v17 = vpop.permute.xlu0 %677 }
  0x99   :  { %737 = vrot.lane.b32.xlu1 %v736_v34, %s768_s3  ;;  %752 = vrot.lane.b32.xlu0 %v751_v38, %s767_s30  ;;  %v679_v22 = vunpack.i.l.bf16 %v894_v17  ;;  %v680_v38 = vunpack.i.h.bf16 %v894_v17 }
  0x9d   :  { %742 = vrot.lane.b32.xlu1 %v741_v40, %s768_s3  ;;  %232 = vrot.lane.b32.xlu0 %v225_v39, %s769_s4  ;;  %v140_v39 = vsel %vm139_vm11, %v679_v22, %v669_v62 }
  0xa1   :  { %234 = vrot.lane.b32.xlu1 %v226_v41, %s769_s4  ;;  %370 = vrot.lane.b32.xlu0 %v363_v42, %s769_s4  ;;  %v210_v41 = vsel %vm208_vm12, %v684_v54, %v685_v53  ;;  %v309_v53 = vsel %vm139_vm11, %v674_v29, %v675_v7 }
  0xa5   :  { %372 = vrot.lane.b32.xlu1 %v364_v43, %s769_s4  ;;  %230 = vrot.lane.b32.xlu0 %v224_v44, %s769_s4 }
  0xa9   :  { %368 = vrot.lane.b32.xlu1 %v362_v45, %s769_s4 }
  0xf7   :  { %v698_v18 = vpop.permute.xlu0 %697 }
  0xf8   :  { %v699_v55 = vunpack.i.l.bf16 %v698_v18  ;;  %v700_v14 = vunpack.i.h.bf16 %v698_v18 }
  0xfb   :  { %v703_v49 = vpop.permute.xlu1 %702  ;;  %v898_v15 = vpop.permute.xlu0 %712 }
  0xfc   :  { %v704_v58 = vunpack.i.l.bf16 %v703_v49  ;;  %v705_v19 = vunpack.i.h.bf16 %v703_v49  ;;  %v714_v13 = vunpack.i.l.bf16 %v898_v15  ;;  %v715_v62 = vunpack.i.h.bf16 %v898_v15 }
  0xff   :  { %v900_v50 = vpop.permute.xlu1 %707  ;;  %v718_v16 = vpop.permute.xlu0 %717 }
 0x100   :  { %v720_v51 = vunpack.i.h.bf16 %v718_v16  ;;  %v719_v52 = vunpack.i.l.bf16 %v718_v16  ;;  %v709_v33 = vunpack.i.l.bf16 %v900_v50  ;;  %v710_v16 = vunpack.i.h.bf16 %v900_v50 }
 0x102   :  { %v98_v0 = vsel %vm96_vm10, %v719_v52, %v720_v51  ;;  %v97_v1 = vsel %vm96_vm10, %v699_v55, %v719_v52 }
 0x103   :  { %v723_v56 = vpop.permute.xlu1 %722  ;;  %v728_v61 = vpop.permute.xlu0 %727 }
 0x104   :  { %v725_v59 = vunpack.i.h.bf16 %v723_v56  ;;  %v724_v60 = vunpack.i.l.bf16 %v723_v56  ;;  %v730_v2 = vunpack.i.h.bf16 %v728_v61  ;;  %v729_v3 = vunpack.i.l.bf16 %v728_v61 }
 0x105   :  { %v695_v56 = vunpack.i.h.bf16 %v896_v48  ;;  %v209_v48 = vsel %vm208_vm12, %v694_v12, %v684_v54 }
 0x106   :  { %v128_v4 = vsel %vm126_vm13, %v724_v60, %v725_v59  ;;  %v127_v5 = vsel %vm126_vm13, %v704_v58, %v724_v60  ;;  %v279_v25 = vsel %vm96_vm10, %v729_v3, %v730_v2  ;;  %v278_v27 = vsel %vm96_vm10, %v700_v14, %v729_v3 }
 0x107   :  { %v733_v9 = vpop.permute.xlu1 %732  ;;  %v584_v10 = vpack.c.bf16 %v128_v4, %v98_v0  ;;  %v586_v11 = vpack.c.bf16 %v127_v5, %v97_v1  ;;  %v748_v21 = vpop.permute.xlu0 %747  ;;  %v308_v60 = vsel %vm139_vm11, %v680_v38, %v674_v29  ;;  %v357_v5 = vsel %vm208_vm12, %v689_v6, %v690_v63  ;;  %v380_v63 = vld [vmem:[%s972_s1] sm:$0xff] }
 0x108   :  { %v735_v8 = vunpack.i.h.bf16 %v733_v9  ;;  %v734_v20 = vunpack.i.l.bf16 %v733_v9  ;;  %v750_v23 = vunpack.i.h.bf16 %v748_v21  ;;  %v749_v24 = vunpack.i.l.bf16 %v748_v21 }
 0x109   :  { %585 = vmatprep.subr.bf16.mxu0 %v584_v10  ;;  %v356_v54 = vsel %vm208_vm12, %v695_v56, %v689_v6 }
 0x10a   :  { %587 = vmatpush1.bf16.msra.mxu0 %v586_v11  ;;  %v297_v26 = vsel %vm126_vm13, %v734_v20, %v735_v8  ;;  %v296_v28 = vsel %vm126_vm13, %v705_v19, %v734_v20  ;;  %v197_v40 = vsel %vm195_vm14, %v749_v24, %v750_v23  ;;  %v196_v58 = vsel %vm195_vm14, %v714_v13, %v749_v24 }
 0x10b   :  { %v738_v30 = vpop.permute.xlu1 %737  ;;  %v600_v31 = vpack.c.bf16 %v297_v26, %v279_v25  ;;  %v602_v32 = vpack.c.bf16 %v296_v28, %v278_v27  ;;  %v753_v36 = vpop.permute.xlu0 %752  ;;  %v592_v57 = vpack.c.bf16 %v210_v41, %v197_v40  ;;  %v594_v4 = vpack.c.bf16 %v209_v48, %v196_v58 }
 0x10c   :  { %v740_v34 = vunpack.i.h.bf16 %v738_v30  ;;  %v739_v35 = vunpack.i.l.bf16 %v738_v30  ;;  %v755_v42 = vunpack.i.h.bf16 %v753_v36  ;;  %v754_v43 = vunpack.i.l.bf16 %v753_v36 }
 0x10d   :  { %601 = vmatprep.subr.bf16.mxu1 %v600_v31 }
 0x10e   :  { %603 = vmatpush1.bf16.msra.mxu1 %v602_v32  ;;  %v169_v44 = vsel %vm167_vm15, %v739_v35, %v740_v34  ;;  %v168_v45 = vsel %vm167_vm15, %v709_v33, %v739_v35  ;;  %v345_v50 = vsel %vm195_vm14, %v754_v43, %v755_v42  ;;  %v344_v15 = vsel %vm195_vm14, %v715_v62, %v754_v43 }
 0x10f   :  { %v743_v17 = vpop.permute.xlu1 %742  ;;  %v588_v18 = vpack.c.bf16 %v169_v44, %v141_v37  ;;  %v590_v49 = vpack.c.bf16 %v168_v45, %v140_v39  ;;  %v233_v55 = vpop.permute.xlu0 %232  ;;  %v608_v7 = vpack.c.bf16 %v357_v5, %v345_v50  ;;  %v610_v11 = vpack.c.bf16 %v356_v54, %v344_v15 }
 0x110   :  { %v745_v51 = vunpack.i.h.bf16 %v743_v17  ;;  %v744_v52 = vunpack.i.l.bf16 %v743_v17 }
 0x111   :  { %589 = vmatprep.subr.bf16.mxu0 %v588_v18 }
 0x112   :  { %591 = vmatpush1.bf16.msra.mxu0 %v590_v49  ;;  %v327_v59 = vsel %vm167_vm15, %v744_v52, %v745_v51  ;;  %v326_v61 = vsel %vm167_vm15, %v710_v16, %v744_v52 }
 0x113   :  { %v235_v0 = vpop.permute.xlu1 %234  ;;  %593 = vmatprep.subr.bf16.mxu0 %v592_v57  ;;  %v604_v1 = vpack.c.bf16 %v327_v59, %v309_v53  ;;  %v606_v2 = vpack.c.bf16 %v326_v61, %v308_v60  ;;  %v371_v3 = vpop.permute.xlu0 %370 }
 0x114   :  { %v238_v9 = vsel %vm236_vm0, %v233_v55, %v235_v0 }
 0x115   :  { %605 = vmatprep.subr.bf16.mxu1 %v604_v1 }
 0x116   :  { %595 = vmatpush1.bf16.msra.mxu0 %v594_v4  ;;  %607 = vmatpush1.bf16.msra.mxu1 %v606_v2 }
 0x117   :  { %v373_v46 = vpop.permute.xlu1 %372  ;;  %437 = vmatprep.subr.mxu0 %v238_v9  ;;  %609 = vmatprep.subr.bf16.mxu1 %v608_v7  ;;  %v231_v10 = vpop.permute.xlu0 %230 }
 0x118   :  { %v237_v14 = vsel %vm236_vm0, %v231_v10, %v233_v55  ;;  %v375_v19 = vsel %vm236_vm0, %v371_v3, %v373_v46 }
 0x11a   :  { %438 = vmatpush1.msra.mxu0 %v237_v14  ;;  %611 = vmatpush1.bf16.msra.mxu1 %v610_v11 }
 0x11b   :  { %v369_v8 = vpop.permute.xlu1 %368  ;;  %508 = vmatprep.subr.mxu1 %v375_v19  ;;  %578 = vmatmul.mubr.msk.f32.vlgmr.msra.gmra.mrb[0].mxu0 %vm417_vm1, %v380_v63 }
 0x11c   :  { %v374_v47 = vsel %vm236_vm0, %v369_v8, %v371_v3 }
 0x11e   :  { %509 = vmatpush1.msra.mxu1 %v374_v47 }
 0x11f   :  { %579 = vmatmul.mubr.msk.f32.vlgmr.msra.gmra.mrb[0].mxu1 %vm417_vm1, %v380_v63 }
 0x1ee   :  { %v487_v6 = vpop.f32.mrb[0].mxu0 }
 0x1ef   :  { %563 = vst [vmem:[%s973_s2] sm:$0xff] %v487_v6  ;;  %v489_v20 = vpop.f32.mrb[1].mxu0 }
 0x1f0   :  { %564 = vst [vmem:[%s973_s2 + $0x8] sm:$0xff] %v489_v20 }
 0x1f2   :  { %v558_v21 = vpop.f32.mrb[0].mxu1 }
 0x1f3   :  { %565 = vst [vmem:[%s973_s2 + $0x10] sm:$0xff] %v558_v21  ;;  %v560_v22 = vpop.f32.mrb[1].mxu1 }
 0x1f4   :  { %566 = vst [vmem:[%s973_s2 + $0x18] sm:$0xff] %v560_v22 }

</bundles_post_ra>
